<compile_context>
chip_gen: v5e
topology: v5e:2x2
jax: 0.10.0
libtpu: 0.0.40
codegen_flags: <defaults>
</compile_context>

<pallas_src>
import jax
import jax.numpy as jnp
import numpy as np
from jax import lax
from jax.experimental import pallas as pl
from jax.experimental.pallas import tpu as pltpu


def _round_up(n, m):
    return ((n + m - 1) // m) * m


def _choose_seq_tile(s, max_tile=512):
    """Largest multiple-of-8 divisor of s up to max_tile, else s (full block)."""
    best = None
    t = 8
    while t <= min(s, max_tile):
        if s % t == 0:
            best = t
        t += 8
    return best if best is not None else s


def _make_kernel(ts: int, kpad: int, eps: float):
    def kernel(
        wid_ref,      # (1, TS, 1) int32  word ids      (+ offset 0)
        tt_ref,       # (1, TS, 1) int32  token_type ids (+ offset)
        vg_ref,       # (1, TS, 1) int32  v_gene ids     (+ offset)
        jg_ref,       # (1, TS, 1) int32  j_gene ids     (+ offset)
        pos_ref,      # (TS, 1)    int32  position ids   (+ offset)
        table_ref,    # (Kpad, E)  f32    fused embedding table (VMEM resident)
        gamma_ref,    # (1, E)     f32
        beta_ref,     # (1, E)     f32
        out_ref,      # (1, TS, E) f32
    ):
        # 1) One multi-hot matrix covering all five lookups (row offsets were
        #    pre-added in the wrapper, so the five ids per token hit five
        #    disjoint rows of the fused table).
        iota = lax.broadcasted_iota(jnp.int32, (ts, kpad), 1)
        mh = (iota == wid_ref[0]).astype(jnp.float32)
        mh = mh + (iota == tt_ref[0]).astype(jnp.float32)
        mh = mh + (iota == vg_ref[0]).astype(jnp.float32)
        mh = mh + (iota == jg_ref[0]).astype(jnp.float32)
        mh = mh + (iota == pos_ref[...]).astype(jnp.float32)

        # 2) Single MXU matmul == sum of the five embedding lookups.
        x = jnp.dot(mh, table_ref[...], preferred_element_type=jnp.float32)

        # 3) Fused LayerNorm (biased variance, torch semantics) + affine,
        #    lane-dense store of the whole tile.
        mean = jnp.mean(x, axis=-1, keepdims=True)
        xm = x - mean
        var = jnp.mean(xm * xm, axis=-1, keepdims=True)
        y = xm * lax.rsqrt(var + eps)
        out_ref[0] = (y * gamma_ref[...] + beta_ref[...]).astype(out_ref.dtype)
        # TODO(synk): training-mode dropout (pltpu.prng_random_bits mask) is
        # not emitted; nn.Dropout is identity at inference time.

    return kernel


def albert_tcr_embeddings(
    input_ids,
    token_type_ids,
    v_gene_ids,
    j_gene_ids,
    position_ids,
    params,
    *,
    eps: float = 1e-12,
    max_seq_tile: int = 512,
):
    B, S = input_ids.shape
    E = params["word"].shape[1]
    # TODO(synk): if embedding_size is not a multiple of 128, pad E (and mask
    # the LayerNorm reduction) to keep output stores lane-dense.
    TS = _choose_seq_tile(S, max_seq_tile)

    # ---- Build the fused table: [word | token_type | v_gene | j_gene | pos],
    #      zero-padded to a multiple of 128 rows (MXU depth). --------------
    tables = [
        params["word"], params["token_type"], params["v_gene"],
        params["j_gene"], params["position"],
    ]
    sizes = [int(t.shape[0]) for t in tables]
    offsets = [0]
    for s in sizes[:-1]:
        offsets.append(offsets[-1] + s)
    K0 = sum(sizes)
    Kpad = _round_up(max(K0, 128), 128)

    pieces = [t.astype(jnp.float32) for t in tables]
    if Kpad > K0:
        pieces.append(jnp.zeros((Kpad - K0, E), jnp.float32))
    fused_table = jnp.concatenate(pieces, axis=0)          # (Kpad, E)

    gamma = params["gamma"].reshape(1, E).astype(jnp.float32)
    beta = params["beta"].reshape(1, E).astype(jnp.float32)

    # ---- Pre-offset id streams (all plain VMEM blocks, no SMEM prefetch). --
    ids3 = lambda a, off: (a.astype(jnp.int32) + jnp.int32(off)).reshape(B, S, 1)
    wid3 = ids3(input_ids, offsets[0])
    tt3 = ids3(token_type_ids, offsets[1])
    vg3 = ids3(v_gene_ids, offsets[2])
    jg3 = ids3(j_gene_ids, offsets[3])
    pos2 = (position_ids.astype(jnp.int32) + jnp.int32(offsets[4])).reshape(S, 1)

    tile_ids_spec = pl.BlockSpec((1, TS, 1), lambda b, st: (b, st, 0))
    const_spec = lambda shape: pl.BlockSpec(shape, lambda b, st: (0, 0))

    grid_spec = pltpu.PrefetchScalarGridSpec(
        num_scalar_prefetch=0,
        grid=(B, S // TS),
        in_specs=[
            tile_ids_spec,                                   # word ids
            tile_ids_spec,                                   # token_type ids
            tile_ids_spec,                                   # v_gene ids
            tile_ids_spec,                                   # j_gene ids
            pl.BlockSpec((TS, 1), lambda b, st: (st, 0)),    # position ids
            const_spec((Kpad, E)),                           # fused table (VMEM)
            const_spec((1, E)),                              # gamma
            const_spec((1, E)),                              # beta
        ],
        out_specs=pl.BlockSpec((1, TS, E), lambda b, st: (b, st, 0)),
    )

    return pl.pallas_call(
        _make_kernel(TS, Kpad, eps),
        out_shape=jax.ShapeDtypeStruct((B, S, E), jnp.float32),
        grid_spec=grid_spec,
        compiler_params=pltpu.CompilerParams(
            dimension_semantics=("parallel", "parallel"),
            # Explicit limit (well under every generation's physical VMEM,
            # above v5e's 16 MiB scoped default).
            vmem_limit_bytes=32 * 1024 * 1024,
        ),
    )(wid3, tt3, vg3, jg3, pos2, fused_table, gamma, beta)


def reference(input_ids, token_type_ids, v_gene_ids, j_gene_ids, position_ids, params, eps):
    x = (
        params["word"][input_ids]
        + params["token_type"][token_type_ids]
        + params["v_gene"][v_gene_ids]
        + params["j_gene"][j_gene_ids]
        + params["position"][position_ids][None, :, :]
    )
    mean = jnp.mean(x, axis=-1, keepdims=True)
    var = jnp.mean(jnp.square(x - mean), axis=-1, keepdims=True)
    y = (x - mean) * lax.rsqrt(var + eps)
    return y * params["gamma"] + params["beta"]


if __name__ == "__main__":
    # Small synthetic config (mirrors AlbertConfig fields used by the module).
    vocab_size = 32
    embedding_size = 128
    max_position_embeddings = 16
    type_vocab_size = 2
    pad_token_id = 0
    layer_norm_eps = 1e-12
    B, S = 2, 8

    key = jax.random.PRNGKey(0)
    ks = jax.random.split(key, 10)

    def emb(k, n, e, pad_idx=None):
        w = 0.02 * jax.random.normal(k, (n, e), jnp.float32)
        if pad_idx is not None:
            w = w.at[pad_idx].set(0.0)  # nn.Embedding zeroes the padding row
        return w

    params = {
        "word": emb(ks[0], vocab_size, embedding_size, pad_token_id),
        "position": emb(ks[1], max_position_embeddings, embedding_size),
        "token_type": emb(ks[2], type_vocab_size, embedding_size),
        "v_gene": emb(ks[3], 65, embedding_size, 64),
        "j_gene": emb(ks[4], 15, embedding_size, 14),
        "gamma": jnp.ones((embedding_size,), jnp.float32),
        "beta": jnp.zeros((embedding_size,), jnp.float32),
    }

    input_ids = jax.random.randint(ks[5], (B, S), 1, vocab_size, jnp.int32)
    input_ids = input_ids.at[:, -1].set(pad_token_id)            # some padding tokens
    token_type_ids = jnp.zeros((B, S), jnp.int32)                # buffered default
    v_gene_ids = jnp.tile(jax.random.randint(ks[6], (B, 1), 0, 65, jnp.int32), (1, S))
    j_gene_ids = jnp.tile(jax.random.randint(ks[7], (B, 1), 0, 15, jnp.int32), (1, S))
    position_ids = jnp.arange(S, dtype=jnp.int32)                # past_key_values_length=0

    out = albert_tcr_embeddings(
        input_ids, token_type_ids, v_gene_ids, j_gene_ids, position_ids,
        params, eps=layer_norm_eps,
    )
    out = jax.block_until_ready(out)

    ref = reference(input_ids, token_type_ids, v_gene_ids, j_gene_ids,
                    position_ids, params, layer_norm_eps)
    np.testing.assert_allclose(np.asarray(out), np.asarray(ref), rtol=1e-5, atol=1e-5)

    print("KERNEL_OK")
</pallas_src>

<mosaic_0001>
module attributes {stable_mosaic.version = 11 : i64} {
  func.func @kernel(%arg0: i32, %arg1: i32, %arg2: memref<1x8x1xi32, #tpu.memory_space<vmem>>, %arg3: memref<1x8x1xi32, #tpu.memory_space<vmem>>, %arg4: memref<1x8x1xi32, #tpu.memory_space<vmem>>, %arg5: memref<1x8x1xi32, #tpu.memory_space<vmem>>, %arg6: memref<8x1xi32, #tpu.memory_space<vmem>>, %arg7: memref<256x128xf32, #tpu.memory_space<vmem>>, %arg8: memref<1x128xf32, #tpu.memory_space<vmem>>, %arg9: memref<1x128xf32, #tpu.memory_space<vmem>>, %arg10: memref<1x8x128xf32, #tpu.memory_space<vmem>>) attributes {dimension_semantics = [#tpu.dimension_semantics<parallel>, #tpu.dimension_semantics<parallel>], iteration_bounds = array<i64: 2, 1>, scalar_prefetch = 0 : i64, scratch_operands = 0 : i64, tpu.core_type = #tpu.core_type<tc>, window_params = [{transform_indices = @transform_0, window_bounds = array<i64: 1, 8, 1>}, {transform_indices = @transform_1, window_bounds = array<i64: 1, 8, 1>}, {transform_indices = @transform_2, window_bounds = array<i64: 1, 8, 1>}, {transform_indices = @transform_3, window_bounds = array<i64: 1, 8, 1>}, {transform_indices = @transform_4, window_bounds = array<i64: 8, 1>}, {pipeline_mode = #tpu.pipeline_mode<synchronous>, transform_indices = @transform_5, window_bounds = array<i64: 256, 128>}, {pipeline_mode = #tpu.pipeline_mode<synchronous>, transform_indices = @transform_6, window_bounds = array<i64: 1, 128>}, {pipeline_mode = #tpu.pipeline_mode<synchronous>, transform_indices = @transform_7, window_bounds = array<i64: 1, 128>}, {transform_indices = @transform_8, window_bounds = array<i64: 1, 8, 128>}]} {
    %0 = tpu.iota {dimensions = array<i32: 1>} : vector<8x256xi32>
    %c0 = arith.constant 0 : index
    %c0_0 = arith.constant 0 : index
    %c0_1 = arith.constant 0 : index
    %1 = vector.load %arg2[%c0, %c0_0, %c0_1] : memref<1x8x1xi32, #tpu.memory_space<vmem>>, vector<1x8x1xi32>
    %2 = vector.shape_cast %1 : vector<1x8x1xi32> to vector<8x1xi32>
    %3 = vector.broadcast %2 : vector<8x1xi32> to vector<8x256xi32>
    %4 = arith.cmpi eq, %0, %3 : vector<8x256xi32>
    %5 = arith.extui %4 : vector<8x256xi1> to vector<8x256xi32>
    %6 = arith.sitofp %5 : vector<8x256xi32> to vector<8x256xf32>
    %c0_2 = arith.constant 0 : index
    %c0_3 = arith.constant 0 : index
    %c0_4 = arith.constant 0 : index
    %7 = vector.load %arg3[%c0_2, %c0_3, %c0_4] : memref<1x8x1xi32, #tpu.memory_space<vmem>>, vector<1x8x1xi32>
    %8 = vector.shape_cast %7 : vector<1x8x1xi32> to vector<8x1xi32>
    %9 = vector.broadcast %8 : vector<8x1xi32> to vector<8x256xi32>
    %10 = arith.cmpi eq, %0, %9 : vector<8x256xi32>
    %11 = arith.extui %10 : vector<8x256xi1> to vector<8x256xi32>
    %12 = arith.sitofp %11 : vector<8x256xi32> to vector<8x256xf32>
    %13 = arith.addf %6, %12 : vector<8x256xf32>
    %c0_5 = arith.constant 0 : index
    %c0_6 = arith.constant 0 : index
    %c0_7 = arith.constant 0 : index
    %14 = vector.load %arg4[%c0_5, %c0_6, %c0_7] : memref<1x8x1xi32, #tpu.memory_space<vmem>>, vector<1x8x1xi32>
    %15 = vector.shape_cast %14 : vector<1x8x1xi32> to vector<8x1xi32>
    %16 = vector.broadcast %15 : vector<8x1xi32> to vector<8x256xi32>
    %17 = arith.cmpi eq, %0, %16 : vector<8x256xi32>
    %18 = arith.extui %17 : vector<8x256xi1> to vector<8x256xi32>
    %19 = arith.sitofp %18 : vector<8x256xi32> to vector<8x256xf32>
    %20 = arith.addf %13, %19 : vector<8x256xf32>
    %c0_8 = arith.constant 0 : index
    %c0_9 = arith.constant 0 : index
    %c0_10 = arith.constant 0 : index
    %21 = vector.load %arg5[%c0_8, %c0_9, %c0_10] : memref<1x8x1xi32, #tpu.memory_space<vmem>>, vector<1x8x1xi32>
    %22 = vector.shape_cast %21 : vector<1x8x1xi32> to vector<8x1xi32>
    %23 = vector.broadcast %22 : vector<8x1xi32> to vector<8x256xi32>
    %24 = arith.cmpi eq, %0, %23 : vector<8x256xi32>
    %25 = arith.extui %24 : vector<8x256xi1> to vector<8x256xi32>
    %26 = arith.sitofp %25 : vector<8x256xi32> to vector<8x256xf32>
    %27 = arith.addf %20, %26 : vector<8x256xf32>
    %c0_11 = arith.constant 0 : index
    %c0_12 = arith.constant 0 : index
    %28 = vector.load %arg6[%c0_11, %c0_12] : memref<8x1xi32, #tpu.memory_space<vmem>>, vector<8x1xi32>
    %29 = vector.broadcast %28 : vector<8x1xi32> to vector<8x256xi32>
    %30 = arith.cmpi eq, %0, %29 : vector<8x256xi32>
    %31 = arith.extui %30 : vector<8x256xi1> to vector<8x256xi32>
    %32 = arith.sitofp %31 : vector<8x256xi32> to vector<8x256xf32>
    %33 = arith.addf %27, %32 : vector<8x256xf32>
    %c0_13 = arith.constant 0 : index
    %c0_14 = arith.constant 0 : index
    %34 = vector.load %arg7[%c0_13, %c0_14] : memref<256x128xf32, #tpu.memory_space<vmem>>, vector<256x128xf32>
    %cst = arith.constant dense<0.000000e+00> : vector<8x128xf32>
    %35 = tpu.matmul %33, %34, %cst {dimension_numbers = #tpu.dot_dimension_numbers<[1], [0], [0], [1], [0, 0, 1, 1], [], []>} : vector<8x256xf32>, vector<256x128xf32>, vector<8x128xf32> -> vector<8x128xf32>
    %cst_15 = arith.constant dense<0.000000e+00> : vector<8xf32>
    %36 = vector.multi_reduction <add>, %35, %cst_15 [1] : vector<8x128xf32> to vector<8xf32>
    %37 = vector.shape_cast %36 : vector<8xf32> to vector<8x1xf32>
    %cst_16 = arith.constant 1.280000e+02 : f32
    %38 = vector.broadcast %cst_16 : f32 to vector<8x1xf32>
    %39 = arith.divf %37, %38 : vector<8x1xf32>
    %40 = vector.broadcast %39 : vector<8x1xf32> to vector<8x128xf32>
    %41 = arith.subf %35, %40 : vector<8x128xf32>
    %42 = arith.mulf %41, %41 : vector<8x128xf32>
    %cst_17 = arith.constant dense<0.000000e+00> : vector<8xf32>
    %43 = vector.multi_reduction <add>, %42, %cst_17 [1] : vector<8x128xf32> to vector<8xf32>
    %44 = vector.shape_cast %43 : vector<8xf32> to vector<8x1xf32>
    %cst_18 = arith.constant 1.280000e+02 : f32
    %45 = vector.broadcast %cst_18 : f32 to vector<8x1xf32>
    %46 = arith.divf %44, %45 : vector<8x1xf32>
    %cst_19 = arith.constant 9.99999996E-13 : f32
    %47 = vector.broadcast %cst_19 : f32 to vector<8x1xf32>
    %48 = arith.addf %46, %47 : vector<8x1xf32>
    %49 = math.rsqrt %48 : vector<8x1xf32>
    %50 = vector.broadcast %49 : vector<8x1xf32> to vector<8x128xf32>
    %51 = arith.mulf %41, %50 : vector<8x128xf32>
    %c0_20 = arith.constant 0 : index
    %c0_21 = arith.constant 0 : index
    %52 = vector.load %arg8[%c0_20, %c0_21] : memref<1x128xf32, #tpu.memory_space<vmem>>, vector<1x128xf32>
    %53 = vector.broadcast %52 : vector<1x128xf32> to vector<8x128xf32>
    %54 = arith.mulf %51, %53 : vector<8x128xf32>
    %c0_22 = arith.constant 0 : index
    %c0_23 = arith.constant 0 : index
    %55 = vector.load %arg9[%c0_22, %c0_23] : memref<1x128xf32, #tpu.memory_space<vmem>>, vector<1x128xf32>
    %56 = vector.broadcast %55 : vector<1x128xf32> to vector<8x128xf32>
    %57 = arith.addf %54, %56 : vector<8x128xf32>
    %c0_24 = arith.constant 0 : index
    %c0_25 = arith.constant 0 : index
    %c0_26 = arith.constant 0 : index
    %58 = vector.load %arg10[%c0_24, %c0_25, %c0_26] : memref<1x8x128xf32, #tpu.memory_space<vmem>>, vector<1x8x128xf32>
    %59 = vector.shape_cast %58 : vector<1x8x128xf32> to vector<8x128xf32>
    %60 = vector.shape_cast %57 : vector<8x128xf32> to vector<1x8x128xf32>
    tpu.vector_store %arg10[%c0_24, %c0_25, %c0_26], %60 {strides = array<i32>} : memref<1x8x128xf32, #tpu.memory_space<vmem>>, vector<1x8x128xf32>,
    return
  }
  func.func @transform_0(%arg0: i32, %arg1: i32) -> (i32, i32, i32) {
    %c0_i32 = arith.constant 0 : i32
    %c0_i32_0 = arith.constant 0 : i32
    return %arg0, %arg1, %c0_i32 : i32, i32, i32
  }
  func.func @transform_1(%arg0: i32, %arg1: i32) -> (i32, i32, i32) {
    %c0_i32 = arith.constant 0 : i32
    %c0_i32_0 = arith.constant 0 : i32
    return %arg0, %arg1, %c0_i32 : i32, i32, i32
  }
  func.func @transform_2(%arg0: i32, %arg1: i32) -> (i32, i32, i32) {
    %c0_i32 = arith.constant 0 : i32
    %c0_i32_0 = arith.constant 0 : i32
    return %arg0, %arg1, %c0_i32 : i32, i32, i32
  }
  func.func @transform_3(%arg0: i32, %arg1: i32) -> (i32, i32, i32) {
    %c0_i32 = arith.constant 0 : i32
    %c0_i32_0 = arith.constant 0 : i32
    return %arg0, %arg1, %c0_i32 : i32, i32, i32
  }
  func.func @transform_4(%arg0: i32, %arg1: i32) -> (i32, i32) {
    %c0_i32 = arith.constant 0 : i32
    %c0_i32_0 = arith.constant 0 : i32
    return %arg1, %c0_i32 : i32, i32
  }
  func.func @transform_5(%arg0: i32, %arg1: i32) -> (i32, i32) {
    %c0_i32 = arith.constant 0 : i32
    %c0_i32_0 = arith.constant 0 : i32
    %c0_i32_1 = arith.constant 0 : i32
    return %c0_i32, %c0_i32_0 : i32, i32
  }
  func.func @transform_6(%arg0: i32, %arg1: i32) -> (i32, i32) {
    %c0_i32 = arith.constant 0 : i32
    %c0_i32_0 = arith.constant 0 : i32
    %c0_i32_1 = arith.constant 0 : i32
    return %c0_i32, %c0_i32_0 : i32, i32
  }
  func.func @transform_7(%arg0: i32, %arg1: i32) -> (i32, i32) {
    %c0_i32 = arith.constant 0 : i32
    %c0_i32_0 = arith.constant 0 : i32
    %c0_i32_1 = arith.constant 0 : i32
    return %c0_i32, %c0_i32_0 : i32, i32
  }
  func.func @transform_8(%arg0: i32, %arg1: i32) -> (i32, i32, i32) {
    %c0_i32 = arith.constant 0 : i32
    %c0_i32_0 = arith.constant 0 : i32
    return %arg0, %arg1, %c0_i32 : i32, i32, i32
  }
}

</mosaic_0001>

<bundles_post_ra>
// kernel: tpu_custom_call.1
= control target key start
LH: loop header
LB: loop body
LE: loop exit
PB: predicated region body
PF: predicated region fallthrough
CT: control target
= control target key end

     0   :  { %13 = vsyncpa [#allocation3], 0  ;;  %s1167_s0 = inlined_call_operand.vmem [shape: s32[2,8,1], index: 0, kind: input, shape index: {}]   ;;  %s1168_s1 = inlined_call_operand.vmem [shape: s32[2,8,1], index: 1, kind: input, shape index: {}]   ;;  %s1169_s2 = inlined_call_operand.vmem [shape: s32[2,8,1], index: 2, kind: input, shape index: {}]   ;;  %s1170_s3 = inlined_call_operand.vmem [shape: s32[2,8,1], index: 3, kind: input, shape index: {}]   ;;  %s1171_s4 = inlined_call_operand.vmem [shape: s32[8,1], index: 4, kind: input, shape index: {}]   ;;  %s1172_s5 = inlined_call_operand.hbm [shape: f32[256,128], index: 5, kind: input, shape index: {}]   ;;  %s1173_s6 = inlined_call_operand.vmem [shape: f32[1,128], index: 6, kind: input, shape index: {}]   ;;  %s1174_s7 = inlined_call_operand.vmem [shape: f32[1,128], index: 7, kind: input, shape index: {}]   ;;  %s1175_s8 = inlined_call_operand.hbm [shape: f32[2,8,128], index: 8, kind: output, shape index: {}]  }
   0x1   :  { %14 = vsyncpa [#allocation4], 0 }
   0x2   :  { %16 = vsyncpa [#allocation4 + $0x1], 0  ;;  %s1047_s27 = smov 0   ;;  %s1049_s28 = smov 0  }
   0x3   :  { %s1051_s29 = smov 0   ;;  %s1053_s30 = smov 0  }
   0x4   :  { %s1055_s9 = smov 0   ;;  %s1057_s10 = smov 0  }
   0x5 LB: > { %s775_s11 = sadd.s32 4294967295, %s994_s10   ;;  %s776_s12 = sadd.s32 4294967294, %s994_s10   ;;  %s994_s10 = sphi %s1057_s10, %s22_s10   ;;  %s990_s9 = sphi %s1055_s9, %s1182_s9   ;;  %s986_s30 = sphi %s1053_s30, %s1181_s30   ;;  %s982_s29 = sphi %s1051_s29, %s1180_s29   ;;  %s978_s28 = sphi %s1049_s28, %s1179_s28   ;;  %s974_s27 = sphi %s1047_s27, %s1178_s27  }
   0x6   : > { %s34_s13 = sadd.s32 1, %s990_s9  ;;  %s244_s14 = sadd.s32 1, %s982_s29 }
   0x7   : > { %p36_p0 = scmp.ge.s32.totalorder %s34_s13, 2  ;;  %p254_p1 = scmp.ne.s32.totalorder %s982_s29, %s978_s28 }
   0x8   : > { %p255_p2 = scmp.eq.s32.totalorder %s775_s11, 1  ;;  %p260_p3 = scmp.ne.s32.totalorder %s978_s28, %s974_s27 }
   0x9   : > { %s1184_s13 = smov (%p36_p0, %s34_s13), 0  ;;  %p261_p5 = scmp.eq.s32.totalorder %s776_s12, 1 }
   0xa   : > { %p1087_p4 = por %p255_p2, %p254_p1  ;;  %s239_s16 = ssub.s32 %s990_s9, %s1184_s13 }
   0xb   : > { %p777_p6 = scmp.ge.s32.totalorder %s994_s10, 1  ;;  %p242_p7 = scmp.eq.s32.totalorder %s239_s16, 0 }
   0xc   : > { %p1094_p8 = por %p261_p5, %p260_p3  ;;  %p268_p9 = scmp.lt.s32.totalorder %s994_s10, 3 }
   0xd   : > { %s1100_s18 = scalar_select %p242_p7, %s982_s29, %s244_s14  }
   0xe   : > { %p269_p10 = pnand %p777_p6, %p268_p9  ;;  %p816_p11 = scmp.eq.s32.totalorder %s775_s11, 0 }
   0xf   : > { %s286_s21 = sshll.u32 %s1172_s5, 4  ;;  %s996_s22 = smov [#allocation2]   ;;  %s287_s21 = int_to_ptr.hbm [resolvable:$true] %s286_s21 }
  0x10   : > { %p808_p12 = pneg %p269_p10  ;;  %s288_s23 = sshll.u32 %s996_s22, 4  ;;  %s289_s23 = int_to_ptr.vmem [resolvable:$true] %s288_s23 }
  0x11   : > { %s997_s24 = smov 128   ;;  %s998_s25 = smov 8  }
  0x12   : > { %p809_p13 = pnand %p816_p11, %p808_p12  ;;  %350 = sbr.rel (%p269_p10) target bundleno = 562 (0x232), region = 52 }
  0x14   : > { %811 = dma.hbm_to_vmem [thread:$0]  (!%p809_p13), %s287_s21, 4096, %s289_s23, [#allocation3], %s997_s24, %s997_s24, %s998_s25  }
  0x17   : > { %965 = dma.done.wait (%p816_p11), [#allocation3], 4096  }
  0x18   : > { %967 = vsyncadd (%p816_p11), [#allocation3], 4294963200  ;;  %p412_p0 = scmp.lt.s32.totalorder %s986_s30, 1  ;;  %v999_v0 = vmov 0   ;;  %v493_v3 = vld [vmem:[%s1171_s4] sm:$0xff]  ;;  %v520_v4 = vld [vmem:[#allocation2 + $0x78] sm:$0xff]  ;;  %v444_v38 = vlaneseq }
  0x19   : > { %874 = vset.pattern.permute.xlu1 %v999_v0  ;;  %873 = vset.pattern.permute.xlu0 %v999_v0  ;;  %v536_v5 = vld [vmem:[#allocation2 + $0xf8] sm:$0xff]  ;;  %v519_v6 = vld [vmem:[#allocation2 + $0x70] sm:$0xff]  ;;  %v518_v8 = vld [vmem:[#allocation2 + $0x68] sm:$0xff]  ;;  %v1000_v46 = vmov 0.0   ;;  %s799_s20 = sshll.u32 %s986_s30, 3 }
  0x1a   : > { %s413_s26 = scalar_select %p412_p0, %s986_s30, 1  ;;  %875 = vset.pattern.permute.xlu2 %v999_v0  ;;  %537 = vmatpush.msra.mxu0 %v520_v4  ;;  %v535_v7 = vld [vmem:[#allocation2 + $0xf0] sm:$0xff]  ;;  %v534_v9 = vld [vmem:[#allocation2 + $0xe8] sm:$0xff]  ;;  %v517_v11 = vld [vmem:[#allocation2 + $0x60] sm:$0xff]  ;;  %v445_v39 = vand.u32 127, %v444_v38  ;;  %v1001_v4 = vmov 128.0  }
  0x1b   : > { %495 = vperm.xlu2 %875, %v493_v3   ;;  %557 = vmatpush.msra.mxu1 %v536_v5  ;;  %v533_v13 = vld [vmem:[#allocation2 + $0xe0] sm:$0xff]  ;;  %v516_v14 = vld [vmem:[#allocation2 + $0x58] sm:$0xff]  ;;  %v515_v16 = vld [vmem:[#allocation2 + $0x50] sm:$0xff]  ;;  %878 = vrcp.f32 %v1001_v4  ;;  %s627_s25 = scalar_lea.hbm %s1175_s8, %s799_s20 }
  0x1c   : > { %s784_s11 = sshll.u32 %s413_s26, 3  ;;  %538 = vmatpush.msra.mxu0 %v519_v6  ;;  %v532_v15 = vld [vmem:[#allocation2 + $0xd8] sm:$0xff]  ;;  %v531_v17 = vld [vmem:[#allocation2 + $0xd0] sm:$0xff]  ;;  %v514_v18 = vld [vmem:[#allocation2 + $0x48] sm:$0xff]  ;;  %v446_v42 = vadd.s32 128, %v445_v39 }
  0x1d   : > { %s432_s16 = scalar_lea.vmem %s1169_s2, %s784_s11  ;;  %s418_s21 = scalar_lea.vmem %s1167_s0, %s784_s11  ;;  %558 = vmatpush.msra.mxu1 %v535_v7  ;;  %v530_v19 = vld [vmem:[#allocation2 + $0xc8] sm:$0xff]  ;;  %v513_v20 = vld [vmem:[#allocation2 + $0x40] sm:$0xff]  ;;  %v512_v22 = vld [vmem:[#allocation2 + $0x38] sm:$0xff] }
  0x1e   : > { %v469_v1 = vld [vmem:[%s432_s16] sm:$0xff]  ;;  %s439_s26 = scalar_lea.vmem %s1170_s3, %s784_s11  ;;  %s425_s16 = scalar_lea.vmem %s1168_s1, %s784_s11  ;;  %539 = vmatpush.msra.mxu0 %v518_v8  ;;  %v528_v23 = vld [vmem:[#allocation2 + $0xb8] sm:$0xff]  ;;  %v511_v24 = vld [vmem:[#allocation2 + $0x30] sm:$0xff] }
  0x1f   : > { %v447_v2 = vld [vmem:[%s418_s21] sm:$0xff]  ;;  %471 = vperm.xlu1 %874, %v469_v1   ;;  %559 = vmatpush.msra.mxu1 %v534_v9  ;;  %v527_v25 = vld [vmem:[#allocation2 + $0xb0] sm:$0xff]  ;;  %v510_v26 = vld [vmem:[#allocation2 + $0x28] sm:$0xff]  ;;  %s409_s11 = sand.u32 1, %s978_s28  }
  0x20   : > { %449 = vperm.xlu0 %873, %v447_v2   ;;  %v481_v10 = vld [vmem:[%s439_s26] sm:$0xff]  ;;  %540 = vmatpush.msra.mxu0 %v517_v11  ;;  %v526_v27 = vld [vmem:[#allocation2 + $0xa8] sm:$0xff]  ;;  %v508_v30 = vld [vmem:[#allocation2 + $0x18] sm:$0xff]  ;;  %s783_s19 = sshll.u32 %s409_s11, 3  ;;  %s616_s21 = scalar_lea.sflag [#allocation4], %s409_s11 }
  0x21   : > { %v457_v12 = vld [vmem:[%s425_s16] sm:$0xff]  ;;  %560 = vmatpush.msra.mxu1 %v533_v13  ;;  %v524_v31 = vld [vmem:[#allocation2 + $0x98] sm:$0xff]  ;;  %v507_v32 = vld [vmem:[#allocation2 + $0x10] sm:$0xff]  ;;  %v879_v5 = vpop.eup %878  ;;  %s411_s14 = scalar_lea.vmem [#allocation5], %s783_s19  ;;  %s631_s16 = sshll.u32 %s627_s25, 4  ;;  %s632_s16 = int_to_ptr.hbm [resolvable:$true] %s631_s16 }
  0x22   : > { %541 = vmatpush.msra.mxu0 %v516_v14  ;;  %v529_v21 = vld [vmem:[#allocation2 + $0xc0] sm:$0xff]  ;;  %v523_v33 = vld [vmem:[#allocation2 + $0x90] sm:$0xff]  ;;  %v506_v34 = vld [vmem:[#allocation2 + $0x8] sm:$0xff]  ;;  %v580_v6 = vmul.f32 128.0, %v879_v5  ;;  %vm584_vm10 = vweird.f32 %v879_v5  ;;  %s629_s30 = sshll.u32 %s411_s14, 4  ;;  %s926_s22 = sshra.s32 %s632_s16, 4  ;;  %s630_s30 = int_to_ptr.vmem [resolvable:$true] %s629_s30  ;;  %s927_s22 = int_to_ptr.hbm [resolvable:$true] %s926_s22 }
  0x23   : > { %561 = vmatpush.msra.mxu1 %v532_v15  ;;  %v509_v28 = vld [vmem:[#allocation2 + $0x20] sm:$0xff]  ;;  %v522_v35 = vld [vmem:[#allocation2 + $0x88] sm:$0xff]  ;;  %s928_s23 = scalar_lea.hbm %s927_s22, 8  ;;  %s932_s26 = scalar_lea.hbm %s1175_s8, 16 }
  0x24   : > { %542 = vmatpush.msra.mxu0 %v515_v16  ;;  %v525_v29 = vld [vmem:[#allocation2 + $0xa0] sm:$0xff]  ;;  %v581_v7 = vsub.f32 1.0, %v580_v6  ;;  %p929_p1 = scmp.ne.s32.totalorder %s927_s22, %s928_s23  ;;  %p933_p5 = scmp.lt.s32.totalorder %s927_s22, %s1175_s8 }
  0x25   : > { %562 = vmatpush.msra.mxu1 %v531_v17  ;;  %v505_v36 = vld [vmem:[#allocation2] sm:$0xff]  ;;  %p934_p6 = scmp.lt.s32.totalorder %s932_s26, %s928_s23 }
  0x26   : > { %543 = vmatpush.msra.mxu0 %v514_v18  ;;  %v521_v37 = vld [vmem:[#allocation2 + $0x80] sm:$0xff]  ;;  %v582_v8 = vmul.f32 %v879_v5, %v581_v7  ;;  %p930_p2 = pnand %p929_p1, %p1087_p4 }
  0x27   : > { %483 = vperm.xlu1 %874, %v481_v10   ;;  %563 = vmatpush.msra.mxu1 %v530_v19  ;;  %p935_p7 = por %p934_p6, %p933_p5 }
  0x28   : > { %459 = vperm.xlu0 %873, %v457_v12   ;;  %544 = vmatpush.msra.mxu0 %v513_v20  ;;  %v583_v9 = vadd.f32 %v879_v5, %v582_v8  ;;  %p931_p3 = pneg %p930_p2 }
  0x29   : > { %564 = vmatpush.msra.mxu1 %v529_v21 }
  0x2a   : > { %545 = vmatpush.msra.mxu0 %v512_v22  ;;  %v585_v10 = vsel %vm584_vm10, %v879_v5, %v583_v9  ;;  %p936_p9 = pnand %p935_p7, %p931_p3 }
  0x2b   : > { %565 = vmatpush.msra.mxu1 %v528_v23 }
  0x2c   : > { %546 = vmatpush.msra.mxu0 %v511_v24  ;;  %v876_v24 = vld [vmem:[%s1173_s6] ss:$0 sm:$0xff] }
  0x2d   : > { %566 = vmatpush.msra.mxu1 %v527_v25 }
  0x2e   : > { %547 = vmatpush.msra.mxu0 %v510_v26 }
  0x2f   : > { %567 = vmatpush.msra.mxu1 %v526_v27  ;;  %v877_v27 = vld [vmem:[%s1174_s7] ss:$0 sm:$0xff] }
  0x30   : > { %548 = vmatpush.msra.mxu0 %v509_v28 }
  0x31   : > { %568 = vmatpush.msra.mxu1 %v525_v29 }
  0x32   : > { %549 = vmatpush.msra.mxu0 %v508_v30 }
  0x33   : > { %569 = vmatpush.msra.mxu1 %v524_v31 }
  0x34   : > { %550 = vmatpush.msra.mxu0 %v507_v32 }
  0x35   : > { %570 = vmatpush.msra.mxu1 %v523_v33 }
  0x36   : > { %551 = vmatpush.msra.mxu0 %v506_v34 }
  0x37   : > { %571 = vmatpush.msra.mxu1 %v522_v35 }
  0x38   : > { %552 = vmatpush.msra.mxu0 %v505_v36 }
  0x39   : > { %572 = vmatpush.msra.mxu1 %v521_v37 }
  0x75   : > { %v496_v43 = vpop.permute.xlu2 %495 }
  0x76   : > { %vm497_vm2 = vcmp.eq.s32.totalorder %v445_v39, %v496_v43  ;;  %vm498_vm3 = vcmp.eq.s32.totalorder %v446_v42, %v496_v43 }
  0x77   : > { %v796_v59 = vsel %vm497_vm2, 1.0, %v1000_v46  ;;  %v797_v60 = vsel %vm498_vm3, 1.0, %v1000_v46 }
  0x91   : > { %v472_v40 = vpop.permute.xlu1 %471 }
  0x92   : > { %v450_v41 = vpop.permute.xlu0 %449  ;;  %vm473_vm4 = vcmp.eq.s32.totalorder %v445_v39, %v472_v40  ;;  %vm474_vm5 = vcmp.eq.s32.totalorder %v446_v42, %v472_v40 }
  0x93   : > { %vm451_vm0 = vcmp.eq.s32.totalorder %v445_v39, %v450_v41  ;;  %vm452_vm1 = vcmp.eq.s32.totalorder %v446_v42, %v450_v41  ;;  %v792_v53 = vsel %vm473_vm4, 1.0, %v1000_v46  ;;  %v793_v54 = vsel %vm474_vm5, 1.0, %v1000_v46 }
  0x94   : > { %v788_v47 = vsel %vm451_vm0, 1.0, %v1000_v46  ;;  %v789_v48 = vsel %vm452_vm1, 1.0, %v1000_v46 }
  0x99   : > { %v484_v44 = vpop.permute.xlu1 %483 }
  0x9a   : > { %v460_v45 = vpop.permute.xlu0 %459  ;;  %vm485_vm8 = vcmp.eq.s32.totalorder %v445_v39, %v484_v44  ;;  %vm486_vm9 = vcmp.eq.s32.totalorder %v446_v42, %v484_v44 }
  0x9b   : > { %vm461_vm6 = vcmp.eq.s32.totalorder %v445_v39, %v460_v45  ;;  %vm462_vm7 = vcmp.eq.s32.totalorder %v446_v42, %v460_v45  ;;  %v794_v57 = vsel %vm485_vm8, 1.0, %v1000_v46  ;;  %v795_v58 = vsel %vm486_vm9, 1.0, %v1000_v46 }
  0x9c   : > { %v790_v49 = vsel %vm461_vm6, 1.0, %v1000_v46  ;;  %v791_v50 = vsel %vm462_vm7, 1.0, %v1000_v46 }
  0x9d   : > { %v467_v51 = vadd.f32 %v790_v49, %v788_v47  ;;  %v468_v52 = vadd.f32 %v791_v50, %v789_v48 }
  0x9f   : > { %v479_v55 = vadd.f32 %v792_v53, %v467_v51  ;;  %v480_v56 = vadd.f32 %v793_v54, %v468_v52 }
  0xa1   : > { %v491_v61 = vadd.f32 %v794_v57, %v479_v55  ;;  %v492_v62 = vadd.f32 %v795_v58, %v480_v56 }
  0xa3   : > { %v503_v63 = vadd.f32 %v796_v59, %v491_v61  ;;  %v504_v0 = vadd.f32 %v797_v60, %v492_v62 }
  0xa5   : > { %553 = vmatmul.f32.vlgmr.msra.gmra.mxu0 %v503_v63  ;;  %573 = vmatmul.f32.vlgmr.msra.gmra.mxu1 %v504_v0 }
 0x122   : > { %v554_v1 = vpop.f32.mrf.mxu0  ;;  %v574_v2 = vpop.f32.mrf.mxu1 }
 0x123   : > { %v575_v3 = vadd.f32 %v574_v2, %v554_v1 }
 0x125   : > { %577 = vadd.xlane.f32.xlu2 %v575_v3 }
 0x198   : > { %v578_v11 = vpop.xlane.xlu2 %577 }
 0x199   : > { %v586_v12 = vmul.f32 %v585_v10, %v578_v11 }
 0x19b   : > { %v587_v13 = vsub.f32 %v575_v3, %v586_v12 }
 0x19d   : > { %v588_v14 = vmul.f32 %v587_v13, %v587_v13 }
 0x19f   : > { %589 = vadd.xlane.f32.xlu0 %v588_v14 }
 0x212   : > { %v590_v15 = vpop.xlane.xlu0 %589 }
 0x213   : > { %v591_v16 = vmul.f32 %v590_v15, %v585_v10 }
 0x215   : > { %v592_v17 = vadd.f32 1e-12, %v591_v16 }
 0x217   : > { %880 = vrsqrt.f32 %v592_v17  ;;  %vm599_vm12 = vweird.f32 %v592_v17 }
 0x21d   : > { %v881_v18 = vpop.eup %880 }
 0x21e   : > { %v594_v19 = vmul.f32 %v881_v18, %v592_v17  ;;  %vm600_vm11 = vweird.f32 %v881_v18 }
 0x21f   : > { %vm601_vm13 = vmor %vm599_vm12, %vm600_vm11 }
 0x220   : > { %v595_v20 = vmul.f32 %v881_v18, %v594_v19 }
 0x222   : > { %v596_v21 = vmul.f32 0.5, %v595_v20 }
 0x224   : > { %v597_v22 = vsub.f32 1.5, %v596_v21 }
 0x226   : > { %v598_v23 = vmul.f32 %v881_v18, %v597_v22 }
 0x228   : > { %v602_v25 = vsel %vm601_vm13, %v881_v18, %v598_v23 }
 0x229   : > { %v603_v26 = vmul.f32 %v602_v25, %v587_v13 }
 0x22b   : > { %v608_v28 = vmul.f32 %v876_v24, %v603_v26 }
 0x22d   : > { %v613_v29 = vadd.f32 %v877_v27, %v608_v28 }
 0x22f   : > { %614 = vst [vmem:[%s411_s14] sm:$0xff] %v613_v29 }
 0x230   : > { %939 = shalt.err (!%p936_p9)
}
 0x231   : > { %806 = dma.vmem_to_hbm [thread:$0]  (%p1087_p4), %s630_s30, 128, %s632_s16, %s616_s21  }
 0x232 PF: > { %p818_p10 = scmp.ge.s32.totalorder %s994_s10, 2  ;;  %s643_s11 = sand.u32 1, %s974_s27  }
 0x233   : > { %s644_s25 = scalar_lea.sflag [#allocation4], %s643_s11 }
 0x234   : > { %p813_p11 = pnand %p818_p10, %p1094_p8 }
 0x236   : > { %p814_p12 = pneg %p813_p11 }
 0x238   : > { %969 = dma.done.wait (%p814_p12), %s644_s25, 128  }
 0x239   : > { %971 = vsyncadd (%p814_p12), %s644_s25, 4294967168  ;;  %s22_s10 = sadd.s32 1, %s994_s10   ;;  %s1178_s27 = smov %s978_s28 }
 0x23a   : > { %p19_p13 = scmp.ge.s32.totalorder %s22_s10, 4   ;;  %s1179_s28 = smov %s982_s29 }
 0x23b   : > { %s1180_s29 = smov %s1100_s18  ;;  %s1181_s30 = smov %s990_s9 }
 0x23c   : > { %s1182_s9 = smov %s1184_s13  ;;  %21 = sbr.rel (!%p19_p13) target bundleno = 5 (0x5), region = 104 }
 0x241   :  { %650 = vsyncpa [#allocation3], 1 }
 0x242   :  { %652 = vsyncpa [#allocation3 + $0x1], 1 }
 0x243   :  { %653 = vsyncpa [#allocation4], 1 }
 0x244   :  { %655 = vsyncpa [#allocation4 + $0x1], 1 }

</bundles_post_ra>
